<compile_context>
chip_gen: v7x
topology: tpu7x:2x2x1
jax: 0.10.0
libtpu: 0.0.40
codegen_flags: <defaults>
</compile_context>

<pallas_src>
import functools
import math

import jax
import jax.numpy as jnp
from jax.experimental import pallas as pl
from jax.experimental.pallas import tpu as pltpu


def _round_up(x, m):
    return (x + m - 1) // m * m


def _graphconv_kernel(struct_ref, feats_ref, x_ref, w_ref, b_ref, norm_ref,
                      out_ref, *, identity_residual):
    # Fused aggregation: [adj | inc] @ [X ; E] == sum_{e:(s->d)} (x[s] + edge_fea[e])
    agg = jnp.dot(struct_ref[...], feats_ref[...],
                  preferred_element_type=jnp.float32)              # [T, in] f32

    # Pre-scale by deg^{-1/2} so the fc matmul, its bias and the residual can be fused:
    #   norm*(agg@Wfc + b) + x@Wres == (norm*agg)@Wfc + norm*b + x@Wres
    aggn = (agg * norm_ref[...]).astype(feats_ref.dtype)           # [T, in] bf16

    if identity_residual:
        z = aggn                                                   # [T, in]
    else:
        # Fused fc + linear residual: one MXU pass with K = 2*in_dim.
        z = jnp.concatenate([aggn, x_ref[...]], axis=-1)           # [T, 2*in] bf16

    out = jnp.dot(z, w_ref[...], preferred_element_type=jnp.float32)  # [T, out_pad] f32
    out = out + norm_ref[...] * b_ref[...]                             # norm-scaled bias
    if identity_residual:
        out = out + x_ref[...].astype(jnp.float32)                 # identity residual, no matmul
    out_ref[...] = out.astype(out_ref.dtype)


def graph_conv_forward(src, dst, node_fea, edge_fea, w_fc, b_fc, w_res=None,
                       *, tile_n=None):
    """src/dst: int32 [E] edge lists. node_fea: [N, in_dim]. edge_fea: [E, in_dim].
    w_fc: [out_dim, in_dim], b_fc: [out_dim].
    w_res: [out_dim, in_dim] (linear residual) or None (identity residual, in_dim==out_dim)."""
    N, in_dim = node_fea.shape
    E = src.shape[0]
    out_dim = w_fc.shape[0]
    identity_residual = w_res is None
    if identity_residual and in_dim != out_dim:
        raise ValueError("identity residual requires in_dim == out_dim")

    NE = N + E
    out_pad = _round_up(out_dim, 128)     # lane-dense output -> unmasked full-vreg stores

    # Destination-row tile: multiple of 8, budgeted so the double-buffered per-step
    # footprint stays well inside scoped VMEM on v5e (16 MiB) / v6e (32) / v7x (32/64).
    if tile_n is None:
        budget = 20 * 1024 * 1024
        per_row = 2 * (NE * 2 + max(in_dim, out_pad) * 2 + out_pad * 4 + 4)
        tile_n = max(8, min(512, (budget // per_row) // 8 * 8))
    tile_n = min(tile_n, _round_up(N, 8))
    N_pad = _round_up(N, tile_n)
    grid = (N_pad // tile_n,)

    # --- glue (plain JAX): densify graph structure, bf16 (small integer counts -> exact) ---
    e_idx = jnp.arange(E, dtype=jnp.int32)
    rows = jnp.concatenate([dst.astype(jnp.int32), dst.astype(jnp.int32)])
    cols = jnp.concatenate([src.astype(jnp.int32), N + e_idx])
    struct = (jnp.zeros((N_pad, NE), jnp.float32)
              .at[rows, cols].add(1.0)).astype(jnp.bfloat16)        # [N_pad, N+E] = [adj | inc]
    feats = jnp.concatenate([node_fea, edge_fea], axis=0).astype(jnp.bfloat16)   # [N+E, in]

    in_degs = jnp.clip(jnp.zeros((N,), jnp.float32).at[dst].add(1.0), 1.0, None)
    norm = jnp.power(in_degs, -0.5).reshape(N, 1).astype(jnp.float32)
    norm = jnp.pad(norm, ((0, N_pad - N), (0, 0)), constant_values=1.0)          # [N_pad, 1]

    bfc = jnp.zeros((1, out_pad), jnp.float32).at[0, :out_dim].set(b_fc.astype(jnp.float32))

    if identity_residual:
        # Skip the residual matmul entirely; pad x to the output lane width for the add.
        x_in = jnp.zeros((N_pad, out_pad), jnp.bfloat16)
        x_in = x_in.at[:N, :in_dim].set(node_fea.astype(jnp.bfloat16))
        w = jnp.zeros((in_dim, out_pad), jnp.bfloat16)
        w = w.at[:, :out_dim].set(w_fc.T.astype(jnp.bfloat16))
        x_cols, w_rows = out_pad, in_dim
    else:
        x_in = jnp.zeros((N_pad, in_dim), jnp.bfloat16).at[:N].set(node_fea.astype(jnp.bfloat16))
        w = jnp.zeros((2 * in_dim, out_pad), jnp.bfloat16)
        w = w.at[:in_dim, :out_dim].set(w_fc.T.astype(jnp.bfloat16))
        w = w.at[in_dim:, :out_dim].set(w_res.T.astype(jnp.bfloat16))
        x_cols, w_rows = in_dim, 2 * in_dim

    kernel = functools.partial(_graphconv_kernel, identity_residual=identity_residual)

    flops = int(2 * N_pad * NE * in_dim + 2 * N_pad * w_rows * out_pad)
    bytes_accessed = int(struct.size * 2 + feats.size * 2 + x_in.size * 2 + w.size * 2
                         + bfc.size * 4 + norm.size * 4 + N_pad * out_pad * 4)

    out = pl.pallas_call(
        kernel,
        out_shape=jax.ShapeDtypeStruct((N_pad, out_pad), jnp.float32),
        grid=grid,
        in_specs=[
            pl.BlockSpec((tile_n, NE), lambda i: (i, 0)),      # structure tile (row-tiled)
            pl.BlockSpec((NE, in_dim), lambda i: (0, 0)),      # stacked [X ; E] (resident)
            pl.BlockSpec((tile_n, x_cols), lambda i: (i, 0)),  # node features (row-tiled)
            pl.BlockSpec((w_rows, out_pad), lambda i: (0, 0)),  # fused [Wfc^T ; Wres^T]
            pl.BlockSpec((1, out_pad), lambda i: (0, 0)),       # bias (padded to 128 lanes)
            pl.BlockSpec((tile_n, 1), lambda i: (i, 0)),        # deg^-1/2 (row-tiled)
        ],
        out_specs=pl.BlockSpec((tile_n, out_pad), lambda i: (i, 0)),
        compiler_params=pltpu.CompilerParams(
            dimension_semantics=("parallel",),
            vmem_limit_bytes=64 * 1024 * 1024),
        cost_estimate=pl.CostEstimate(
            flops=flops, transcendentals=0, bytes_accessed=bytes_accessed),
    )(struct, feats, x_in, w, bfc, norm)

    return out[:N, :out_dim]


def _reference(src, dst, node_fea, edge_fea, w_fc, b_fc, w_res):
    """Pure-JAX f32 reference of the same forward semantics."""
    N, in_dim = node_fea.shape
    msg = node_fea[src] + edge_fea                                   # u_add_e
    agg = jnp.zeros((N, in_dim), jnp.float32).at[dst].add(msg)       # fn.sum
    rst = agg @ w_fc.T + b_fc
    in_degs = jnp.clip(jnp.zeros((N,), jnp.float32).at[dst].add(1.0), 1.0, None)
    rst = rst * (in_degs ** -0.5)[:, None]
    res = node_fea @ w_res.T if w_res is not None else node_fea
    return rst + res


if __name__ == "__main__":
    key = jax.random.PRNGKey(0)

    # --- case 1: in_dim != out_dim -> '! Linear Residual !' ---
    N, E, in_dim, out_dim = 48, 96, 32, 64
    k_src, k_dst, k_x, k_e, k_wfc, k_bfc, k_wres = jax.random.split(key, 7)
    src = jax.random.randint(k_src, (E,), 0, N, dtype=jnp.int32)
    dst = jax.random.randint(k_dst, (E,), 0, N, dtype=jnp.int32)
    node_fea = jax.random.normal(k_x, (N, in_dim), dtype=jnp.float32)
    edge_fea = jax.random.normal(k_e, (E, in_dim), dtype=jnp.float32)
    bound = 1.0 / math.sqrt(in_dim)
    w_fc = jax.random.uniform(k_wfc, (out_dim, in_dim), jnp.float32, -bound, bound)
    b_fc = jax.random.uniform(k_bfc, (out_dim,), jnp.float32, -bound, bound)
    w_res = jax.random.uniform(k_wres, (out_dim, in_dim), jnp.float32, -bound, bound)

    out = graph_conv_forward(src, dst, node_fea, edge_fea, w_fc, b_fc, w_res,
                             tile_n=16)   # small tile to exercise the multi-step row grid
    out = jax.block_until_ready(out)
    ref = _reference(src, dst, node_fea, edge_fea, w_fc, b_fc, w_res)
    assert out.shape == (N, out_dim)
    assert jnp.allclose(out, ref, atol=5e-2, rtol=5e-2)   # bf16 inputs, f32 accumulation

    # --- case 2: in_dim == out_dim -> 'Identity Residual' (residual matmul skipped) ---
    N2, E2, d2 = 40, 80, 32
    k_src2, k_dst2, k_x2, k_e2, k_wfc2, k_bfc2 = jax.random.split(jax.random.PRNGKey(1), 6)
    src2 = jax.random.randint(k_src2, (E2,), 0, N2, dtype=jnp.int32)
    dst2 = jax.random.randint(k_dst2, (E2,), 0, N2, dtype=jnp.int32)
    x2 = jax.random.normal(k_x2, (N2, d2), dtype=jnp.float32)
    e2 = jax.random.normal(k_e2, (E2, d2), dtype=jnp.float32)
    bound2 = 1.0 / math.sqrt(d2)
    wfc2 = jax.random.uniform(k_wfc2, (d2, d2), jnp.float32, -bound2, bound2)
    bfc2 = jax.random.uniform(k_bfc2, (d2,), jnp.float32, -bound2, bound2)

    out2 = graph_conv_forward(src2, dst2, x2, e2, wfc2, bfc2, None, tile_n=16)
    out2 = jax.block_until_ready(out2)
    ref2 = _reference(src2, dst2, x2, e2, wfc2, bfc2, None)
    assert out2.shape == (N2, d2)
    assert jnp.allclose(out2, ref2, atol=5e-2, rtol=5e-2)

    print("KERNEL_OK")
</pallas_src>

<mosaic_0001>
module attributes {stable_mosaic.version = 11 : i64} {
  func.func @_graphconv_kernel(%arg0: i32, %arg1: memref<16x144xbf16, #tpu.memory_space<vmem>>, %arg2: memref<144x32xbf16, #tpu.memory_space<vmem>>, %arg3: memref<16x32xbf16, #tpu.memory_space<vmem>>, %arg4: memref<64x128xbf16, #tpu.memory_space<vmem>>, %arg5: memref<1x128xf32, #tpu.memory_space<vmem>>, %arg6: memref<16x1xf32, #tpu.memory_space<vmem>>, %arg7: memref<16x128xf32, #tpu.memory_space<vmem>>) attributes {dimension_semantics = [#tpu.dimension_semantics<parallel>], iteration_bounds = array<i64: 3>, scalar_prefetch = 0 : i64, scratch_operands = 0 : i64, tpu.core_type = #tpu.core_type<tc>, window_params = [{transform_indices = @transform_0, window_bounds = array<i64: 16, 144>}, {pipeline_mode = #tpu.pipeline_mode<synchronous>, transform_indices = @transform_1, window_bounds = array<i64: 144, 32>}, {transform_indices = @transform_2, window_bounds = array<i64: 16, 32>}, {pipeline_mode = #tpu.pipeline_mode<synchronous>, transform_indices = @transform_3, window_bounds = array<i64: 64, 128>}, {pipeline_mode = #tpu.pipeline_mode<synchronous>, transform_indices = @transform_4, window_bounds = array<i64: 1, 128>}, {transform_indices = @transform_5, window_bounds = array<i64: 16, 1>}, {transform_indices = @transform_6, window_bounds = array<i64: 16, 128>}]} {
    %c0 = arith.constant 0 : index
    %c0_0 = arith.constant 0 : index
    %0 = vector.load %arg1[%c0, %c0_0] : memref<16x144xbf16, #tpu.memory_space<vmem>>, vector<16x144xbf16>
    %c0_1 = arith.constant 0 : index
    %c0_2 = arith.constant 0 : index
    %1 = vector.load %arg2[%c0_1, %c0_2] : memref<144x32xbf16, #tpu.memory_space<vmem>>, vector<144x32xbf16>
    %cst = arith.constant dense<0.000000e+00> : vector<16x32xf32>
    %2 = tpu.matmul %0, %1, %cst {dimension_numbers = #tpu.dot_dimension_numbers<[1], [0], [0], [1], [0, 0, 1, 1], [], []>} : vector<16x144xbf16>, vector<144x32xbf16>, vector<16x32xf32> -> vector<16x32xf32>
    %c0_3 = arith.constant 0 : index
    %c0_4 = arith.constant 0 : index
    %3 = vector.load %arg6[%c0_3, %c0_4] : memref<16x1xf32, #tpu.memory_space<vmem>>, vector<16x1xf32>
    %4 = vector.broadcast %3 : vector<16x1xf32> to vector<16x32xf32>
    %5 = arith.mulf %2, %4 : vector<16x32xf32>
    %6 = arith.truncf %5 : vector<16x32xf32> to vector<16x32xbf16>
    %c0_5 = arith.constant 0 : index
    %c0_6 = arith.constant 0 : index
    %7 = vector.load %arg3[%c0_5, %c0_6] : memref<16x32xbf16, #tpu.memory_space<vmem>>, vector<16x32xbf16>
    %8 = tpu.concatenate %6, %7 in 1 : vector<16x32xbf16>, vector<16x32xbf16> -> vector<16x64xbf16>
    %c0_7 = arith.constant 0 : index
    %c0_8 = arith.constant 0 : index
    %9 = vector.load %arg4[%c0_7, %c0_8] : memref<64x128xbf16, #tpu.memory_space<vmem>>, vector<64x128xbf16>
    %cst_9 = arith.constant dense<0.000000e+00> : vector<16x128xf32>
    %10 = tpu.matmul %8, %9, %cst_9 {dimension_numbers = #tpu.dot_dimension_numbers<[1], [0], [0], [1], [0, 0, 1, 1], [], []>} : vector<16x64xbf16>, vector<64x128xbf16>, vector<16x128xf32> -> vector<16x128xf32>
    %c0_10 = arith.constant 0 : index
    %c0_11 = arith.constant 0 : index
    %11 = vector.load %arg6[%c0_10, %c0_11] : memref<16x1xf32, #tpu.memory_space<vmem>>, vector<16x1xf32>
    %c0_12 = arith.constant 0 : index
    %c0_13 = arith.constant 0 : index
    %12 = vector.load %arg5[%c0_12, %c0_13] : memref<1x128xf32, #tpu.memory_space<vmem>>, vector<1x128xf32>
    %13 = vector.broadcast %11 : vector<16x1xf32> to vector<16x128xf32>
    %14 = vector.broadcast %12 : vector<1x128xf32> to vector<16x128xf32>
    %15 = arith.mulf %13, %14 : vector<16x128xf32>
    %16 = arith.addf %10, %15 : vector<16x128xf32>
    %c0_14 = arith.constant 0 : index
    %c0_15 = arith.constant 0 : index
    %17 = vector.load %arg7[%c0_14, %c0_15] : memref<16x128xf32, #tpu.memory_space<vmem>>, vector<16x128xf32>
    tpu.vector_store %arg7[%c0_14, %c0_15], %16 {strides = array<i32>} : memref<16x128xf32, #tpu.memory_space<vmem>>, vector<16x128xf32>,
    return
  }
  func.func @transform_0(%arg0: i32) -> (i32, i32) {
    %c0_i32 = arith.constant 0 : i32
    %c0_i32_0 = arith.constant 0 : i32
    return %arg0, %c0_i32 : i32, i32
  }
  func.func @transform_1(%arg0: i32) -> (i32, i32) {
    %c0_i32 = arith.constant 0 : i32
    %c0_i32_0 = arith.constant 0 : i32
    %c0_i32_1 = arith.constant 0 : i32
    return %c0_i32, %c0_i32_0 : i32, i32
  }
  func.func @transform_2(%arg0: i32) -> (i32, i32) {
    %c0_i32 = arith.constant 0 : i32
    %c0_i32_0 = arith.constant 0 : i32
    return %arg0, %c0_i32 : i32, i32
  }
  func.func @transform_3(%arg0: i32) -> (i32, i32) {
    %c0_i32 = arith.constant 0 : i32
    %c0_i32_0 = arith.constant 0 : i32
    %c0_i32_1 = arith.constant 0 : i32
    return %c0_i32, %c0_i32_0 : i32, i32
  }
  func.func @transform_4(%arg0: i32) -> (i32, i32) {
    %c0_i32 = arith.constant 0 : i32
    %c0_i32_0 = arith.constant 0 : i32
    %c0_i32_1 = arith.constant 0 : i32
    return %c0_i32, %c0_i32_0 : i32, i32
  }
  func.func @transform_5(%arg0: i32) -> (i32, i32) {
    %c0_i32 = arith.constant 0 : i32
    %c0_i32_0 = arith.constant 0 : i32
    return %arg0, %c0_i32 : i32, i32
  }
  func.func @transform_6(%arg0: i32) -> (i32, i32) {
    %c0_i32 = arith.constant 0 : i32
    %c0_i32_0 = arith.constant 0 : i32
    return %arg0, %c0_i32 : i32, i32
  }
}

</mosaic_0001>

<bundles_post_ra>
// kernel: tpu_custom_call.1
= control target key start
LH: loop header
LB: loop body
LE: loop exit
PB: predicated region body
PF: predicated region fallthrough
CT: control target
= control target key end

     0   :  { %s1652_s0 = inlined_call_operand.hbm [shape: bf16[48,144], index: 0, kind: input, shape index: {}]   ;;  %s1653_s1 = inlined_call_operand.hbm [shape: bf16[144,32], index: 1, kind: input, shape index: {}]   ;;  %s1654_s2 = inlined_call_operand.hbm [shape: bf16[48,32], index: 2, kind: input, shape index: {}]   ;;  %s1655_s3 = inlined_call_operand.hbm [shape: bf16[64,128], index: 3, kind: input, shape index: {}]   ;;  %s1656_s4 = inlined_call_operand.hbm [shape: f32[1,128], index: 4, kind: input, shape index: {}]   ;;  %s1657_s5 = inlined_call_operand.hbm [shape: f32[48,1], index: 5, kind: input, shape index: {}]   ;;  %s1658_s6 = inlined_call_operand.hbm [shape: f32[48,128], index: 6, kind: output, shape index: {}]  }
   0x1   :  { %1679 = sst [smem:[#allocation26_spill]] %s1652_s0 }
   0x2   :  { %1680 = sst [smem:[#allocation27_spill]] %s1653_s1 }
   0x3   :  { %1681 = sst [smem:[#allocation28_spill]] %s1654_s2 }
   0x4   :  { %11 = vsyncpa [#allocation3], 0 }
   0x5   :  { %13 = vsyncpa [#allocation3 + $0x1], 0 }
   0x6   :  { %14 = vsyncpa [#allocation6], 0 }
   0x7   :  { %15 = vsyncpa [#allocation10], 0 }
   0x8   :  { %16 = vsyncpa [#allocation4], 0 }
   0x9   :  { %18 = vsyncpa [#allocation4 + $0x1], 0  ;;  %s1290_s21 = smov 0   ;;  %s1292_s22 = smov 0  }
   0xa   :  { %s1294_s23 = smov 0   ;;  %s1296_s24 = smov 0  }
   0xb LB: > { %1682 = sst [smem:[#allocation20_spill]] %s1224_s21  ;;  %s1311_s25 = sadd.s32 1, %s1236_s24   ;;  %s1236_s24 = sphi %s1296_s24, %s1719_s24   ;;  %s1232_s23 = sphi %s1294_s23, %s1721_s23   ;;  %s1228_s22 = sphi %s1292_s22, %s1723_s22   ;;  %s1224_s21 = sphi %s1290_s21, %s1722_s21  }
   0xc   : > { %1683 = sst [smem:[#allocation21_spill]] %s1232_s23  ;;  %s31_s26 = sadd.s32 1, %s1232_s23 }
   0xd   : > { %1684 = sst [smem:[#allocation22_spill]] %s1236_s24  ;;  %s28_s27 = ssub.s32 %s1236_s24, %s1311_s25 }
   0xe   : > { %1685 = sst [smem:[#allocation23_spill]] %s1311_s25  ;;  %p1659_p0 = scmp.ne.s32.totalorder %s1232_s23, %s1228_s22 }
   0xf   : > { %p29_p1 = scmp.eq.s32.totalorder %s28_s27, 0  ;;  %p39_p2 = scmp.eq.s32.totalorder %s1236_s24, 0 }
  0x10   : > { %p908_p3 = scmp.lt.s32.totalorder %s1236_s24, 3  ;;  %s246_s29 = sand.u32 1, %s1236_s24  }
  0x11   : > { %s1321_s28 = scalar_select %p29_p1, %s1232_s23, %s31_s26  }
  0x12   : > { %p40_p4 = por %p39_p2, %p1659_p0  ;;  %s248_s30 = sand.u32 1, %s1232_s23  }
  0x13   : > { %1686 = sst [smem:[#allocation24_spill]] %s1321_s28  ;;  %s1330_s7 = sshll.u32 %s248_s30, 4 }
  0x14   : > { %s840_s8 = sshll.u32 %s1236_s24, 8  ;;  %s1687_s0 = sld [smem:[#allocation26_spill]] }
  0x15   : > { %s250_s12 = scalar_lea.vmem [#allocation2], %s1330_s7  ;;  %p1341_p5 = pnand %p908_p3, %p40_p4 }
  0x16   : > { %s258_s13 = sshll.u32 %s250_s12, 4  ;;  %s1347_s15 = scalar_lea.sflag [#allocation3], %s246_s29  ;;  %s1345_s13 = int_to_ptr.vmem [resolvable:$true] %s258_s13 }
  0x17   : > { %s1688_s14 = scalar_select %p1341_p5, 1, 0 }
  0x18   : > { %p1353_p7 = pneg %p1341_p5 }
  0x1a   : > { %s1338_s11 = scalar_lea.hbm %s1687_s0, %s840_s8  ;;  %s981_s20 = scalar_lea.hbm %s1687_s0, 768 }
  0x1b   : > { %s976_s16 = scalar_lea.hbm %s1338_s11, 256  ;;  %p982_p10 = scmp.lt.u32.totalorder %s1338_s11, %s1687_s0 }
  0x1c   : > { %p977_p6 = scmp.ne.s32.totalorder %s1338_s11, %s976_s16  ;;  %p983_p11 = scmp.lt.u32.totalorder %s981_s20, %s976_s16 }
  0x1d   : > { %s1689_s17 = scalar_select %p1353_p7, 1, 0 }
  0x1e   : > { %p979_p8 = pnand %p1353_p7, %p977_p6  ;;  %p984_p12 = por %p983_p11, %p982_p10 }
  0x1f   : > { %p985_p13 = scmp.lt.u32.totalorder %s976_s16, %s1338_s11 }
  0x20   : > { %p980_p9 = pneg %p979_p8 }
  0x21   : > { %p986_p1 = por %p985_p13, %p984_p12 }
  0x23   : > { %p987_p2 = pnand %p986_p1, %p980_p9 }
  0x25   : > { %990 = shalt.err (!%p987_p2)
}
  0x26   : > { %s991_s29 = scalar_lea.vmem %s1345_s13, 256  ;;  %s1238_s9 = smov [#allocation2]  }
  0x27   : > { %p992_p3 = scmp.ne.s32.totalorder %s1345_s13, %s991_s29  ;;  %s996_s10 = sshll.u32 %s1238_s9, 4  ;;  %s997_s10 = int_to_ptr.vmem [resolvable:$false] %s996_s10 }
  0x28   : > { %s998_s12 = scalar_lea.vmem %s997_s10, 512  ;;  %p999_p8 = scmp.lt.s32.totalorder %s1345_s13, %s997_s10 }
  0x29   : > { %p994_p4 = pnand %p992_p3, %p1353_p7  ;;  %p1000_p0 = scmp.lt.s32.totalorder %s998_s12, %s991_s29 }
  0x2b   : > { %p995_p6 = pneg %p994_p4  ;;  %p1001_p10 = por %p1000_p0, %p999_p8 }
  0x2d   : > { %p1002_p11 = pnand %p1001_p10, %p995_p6 }
  0x2f   : > { %1005 = shalt.err (!%p1002_p11)
}
  0x30   : > { %s1660_s16 = smov 128   ;;  %s1661_s18 = smov 8  }
  0x31   : > { %894 = dma.hbm_to_vmem [thread:$0]  (!%p1341_p5), %s1338_s11, 256, %s1345_s13, %s1347_s15, %s1660_s16, %s1660_s16, %s1661_s18  }
  0x32   : > { %s801_s19 = sshll.u32 %s248_s30, 3  ;;  %s1387_s27 = scalar_lea.hbm %s1657_s5, %s840_s8 }
  0x33   : > { %s293_s29 = scalar_lea.vmem [#allocation11], %s1330_s7  ;;  %s1393_s10 = sadd.s32 4294967295, %s1236_s24  }
  0x34   : > { %s300_s9 = sshll.u32 %s293_s29, 4  ;;  %s791_s11 = sadd.s32 4294967294, %s1236_s24   ;;  %s1390_s9 = int_to_ptr.vmem [resolvable:$true] %s300_s9 }
  0x35   : > { %p44_p0 = scmp.ne.s32.totalorder %s1228_s22, %s1224_s21  ;;  %p1668_p9 = scmp.eq.s32.totalorder %s1393_s10, 0 }
  0x36   : > { %p183_p12 = scmp.eq.s32.totalorder %s1393_s10, 2  ;;  %p189_p13 = scmp.eq.s32.totalorder %s791_s11, 2 }
  0x37   : > { %p792_p1 = scmp.ge.s32.totalorder %s1236_s24, 1  ;;  %p1403_p2 = por %p1668_p9, %p44_p0 }
  0x38   : > { %p1691_p3 = scmp.ne.s32.totalorder %s1232_s23, %s1228_s22  ;;  %p1414_p6 = por %p189_p13, %p44_p0 }
  0x39   : > { %s1690_s30 = scalar_select %p1403_p2, 1, 0 }
  0x3a   : > { %p1410_p4 = por %p183_p12, %p1691_p3  ;;  %p196_p8 = scmp.lt.s32.totalorder %s1236_s24, 4 }
  0x3b   : > { %s1693_s8 = scalar_select %p1414_p6, 1, 0 }
  0x3c   : > { %s1692_s7 = scalar_select %p1410_p4, 1, 0 }
  0x3d   : > { %1694 = sst [smem:[#allocation25_spill]] %s1693_s8  ;;  %p1419_p10 = pnand %p792_p1, %p196_p8 }
  0x3e   : > { %s1241_s12 = smov [#allocation5]   ;;  %s841_s26 = sshll.u32 %s1236_s24, 7 }
  0x3f   : > { %s1695_s13 = scalar_select %p1419_p10, 1, 0 }
  0x40   : > { %s208_s20 = sshll.u32 %s1241_s12, 4  ;;  %p881_p11 = pneg %p1419_p10  ;;  %s1423_s20 = int_to_ptr.vmem [resolvable:$true] %s208_s20 }
  0x41   : > { %s1697_s2 = sld [smem:[#allocation28_spill]]  ;;  %s272_s0 = scalar_lea.vmem [#allocation7], %s801_s19 }
  0x42   : > { %p1430_p12 = pnand %p881_p11, %p1668_p9  ;;  %s279_s28 = sshll.u32 %s272_s0, 4  ;;  %s1439_s28 = int_to_ptr.vmem [resolvable:$true] %s279_s28 }
  0x43   : > { %s1698_s1 = sld [smem:[#allocation27_spill]] }
  0x44   : > { %s1696_s29 = scalar_select %p1430_p12, 1, 0 }
  0x45   : > { %p1449_p13 = pneg %p1430_p12 }
  0x47   : > { %s1437_s18 = scalar_lea.hbm %s1697_s2, %s841_s26 }
  0x48   : > { %s1699_s24 = scalar_select %p1449_p13, 1, 0 }
  0x49   : > { %s1006_s25 = scalar_lea.hbm %s1698_s1, 1152 }
  0x4a   : > { %p1007_p0 = scmp.ne.s32.totalorder %s1698_s1, %s1006_s25  ;;  %p1013_p8 = scmp.lt.u32.totalorder %s1006_s25, %s1698_s1 }
  0x4c   : > { %p1009_p1 = pnand %p1449_p13, %p1007_p0 }
  0x4e   : > { %p1010_p3 = pneg %p1009_p1 }
  0x50   : > { %p1015_p11 = pnand %p1013_p8, %p1010_p3 }
  0x52   : > { %1018 = shalt.err (!%p1015_p11)
}
  0x53   : > { %s1019_s21 = scalar_lea.vmem %s1423_s20, 1152  ;;  %p1027_p2 = scmp.lt.s32.totalorder %s1423_s20, %s1423_s20 }
  0x54   : > { %p1020_p9 = scmp.ne.s32.totalorder %s1423_s20, %s1019_s21  ;;  %p1028_p10 = scmp.lt.s32.totalorder %s1019_s21, %s1019_s21 }
  0x56   : > { %p1022_p6 = pnand %p1020_p9, %p1449_p13  ;;  %p1029_p0 = por %p1028_p10, %p1027_p2 }
  0x58   : > { %p1023_p4 = pneg %p1022_p6 }
  0x5a   : > { %p1030_p1 = pnand %p1029_p0, %p1023_p4 }
  0x5c   : > { %1033 = shalt.err (!%p1030_p1)
}
  0x5d   : > { %s1242_s23 = smov 64   ;;  %s1243_s25 = smov 4  }
  0x5e   : > { %884 = dma.hbm_to_vmem [thread:$0]  (!%p1430_p12), %s1698_s1, 1152, %s1423_s20, [#allocation6], %s1242_s23, %s1242_s23, %s1243_s25  }
  0x5f   : > { %s1034_s26 = scalar_lea.hbm %s1437_s18, 128  ;;  %s1039_s0 = scalar_lea.hbm %s1697_s2, 384 }
  0x60   : > { %p1035_p9 = scmp.ne.s32.totalorder %s1437_s18, %s1034_s26  ;;  %p1040_p6 = scmp.lt.u32.totalorder %s1437_s18, %s1697_s2 }
  0x61   : > { %p1041_p10 = scmp.lt.u32.totalorder %s1039_s0, %s1034_s26  ;;  %p1043_p8 = scmp.lt.u32.totalorder %s1034_s26, %s1437_s18 }
  0x62   : > { %p1037_p2 = pnand %p1035_p9, %p1353_p7 }
  0x63   : > { %p1042_p3 = por %p1041_p10, %p1040_p6 }
  0x64   : > { %p1038_p4 = pneg %p1037_p2 }
  0x65   : > { %p1044_p11 = por %p1043_p8, %p1042_p3 }
  0x67   : > { %p1045_p0 = pnand %p1044_p11, %p1038_p4 }
  0x69   : > { %1048 = shalt.err (!%p1045_p0)
}
  0x6a   : > { %s1049_s20 = scalar_lea.vmem %s1439_s28, 128  ;;  %s1244_s19 = smov [#allocation7]  }
  0x6b   : > { %p1050_p1 = scmp.ne.s32.totalorder %s1439_s28, %s1049_s20  ;;  %s1054_s8 = sshll.u32 %s1244_s19, 4  ;;  %s1055_s8 = int_to_ptr.vmem [resolvable:$false] %s1054_s8 }
  0x6c   : > { %s1056_s11 = scalar_lea.vmem %s1055_s8, 256  ;;  %p1057_p12 = scmp.lt.s32.totalorder %s1439_s28, %s1055_s8 }
  0x6d   : > { %p1052_p9 = pnand %p1050_p1, %p1353_p7  ;;  %p1058_p13 = scmp.lt.s32.totalorder %s1056_s11, %s1049_s20 }
  0x6f   : > { %p1053_p2 = pneg %p1052_p9  ;;  %p1059_p6 = por %p1058_p13, %p1057_p12 }
  0x71   : > { %p1060_p10 = pnand %p1059_p6, %p1053_p2 }
  0x73   : > { %1063 = shalt.err (!%p1060_p10)
}
  0x74   : > { %897 = dma.hbm_to_vmem [thread:$0]  (!%p1341_p5), %s1437_s18, 128, %s1439_s28, %s1347_s15, %s1242_s23, %s1242_s23, %s1243_s25  }
  0x75   : > { %s1245_s26 = smov [#allocation8]   ;;  %s1246_s0 = smov [#allocation9]  }
  0x76   : > { %s221_s12 = sshll.u32 %s1245_s26, 4  ;;  %s235_s16 = sshll.u32 %s1246_s0, 4  ;;  %s222_s12 = int_to_ptr.vmem [resolvable:$true] %s221_s12  ;;  %s236_s16 = int_to_ptr.vmem [resolvable:$true] %s235_s16 }
  0x77   : > { %s1064_s19 = scalar_lea.hbm %s1655_s3, 512  ;;  %p1700_p13 = scmp.ne.s32.totalorder %s1699_s24, 0 }
  0x78   : > { %p1065_p12 = scmp.ne.s32.totalorder %s1655_s3, %s1064_s19  ;;  %p1071_p8 = scmp.lt.u32.totalorder %s1064_s19, %s1655_s3 }
  0x7a   : > { %p1067_p4 = pnand %p1065_p12, %p1700_p13 }
  0x7c   : > { %p1068_p3 = pneg %p1067_p4 }
  0x7e   : > { %p1073_p11 = pnand %p1071_p8, %p1068_p3 }
  0x80   : > { %1076 = shalt.err (!%p1073_p11)
}
  0x81   : > { %s1077_s28 = scalar_lea.vmem %s222_s12, 512  ;;  %p1085_p2 = scmp.lt.s32.totalorder %s222_s12, %s222_s12 }
  0x82   : > { %p1078_p0 = scmp.ne.s32.totalorder %s222_s12, %s1077_s28  ;;  %p1086_p6 = scmp.lt.s32.totalorder %s1077_s28, %s1077_s28 }
  0x84   : > { %p1080_p1 = pnand %p1078_p0, %p1700_p13  ;;  %p1087_p10 = por %p1086_p6, %p1085_p2 }
  0x86   : > { %p1081_p9 = pneg %p1080_p1 }
  0x88   : > { %p1088_p5 = pnand %p1087_p10, %p1081_p9 }
  0x8a   : > { %1091 = shalt.err (!%p1088_p5)
}
  0x8b   : > { %p1701_p12 = scmp.ne.s32.totalorder %s1696_s29, 0  ;;  %s1092_s0 = scalar_lea.hbm %s1656_s4, 16 }
  0x8c   : > { %p1093_p4 = scmp.ne.s32.totalorder %s1656_s4, %s1092_s0  ;;  %p1099_p8 = scmp.lt.u32.totalorder %s1092_s0, %s1656_s4 }
  0x8d   : > { %887 = dma.hbm_to_vmem [thread:$0]  (!%p1701_p12), %s1655_s3, 512, %s222_s12, [#allocation6], %s1242_s23, %s1242_s23, %s1243_s25  }
  0x8e   : > { %p1095_p5 = pnand %p1093_p4, %p1700_p13 }
  0x90   : > { %p1096_p3 = pneg %p1095_p5 }
  0x92   : > { %p1101_p11 = pnand %p1099_p8, %p1096_p3 }
  0x94   : > { %1104 = shalt.err (!%p1101_p11)
}
  0x95   : > { %s1105_s11 = scalar_lea.vmem %s236_s16, 16  ;;  %s1112_s23 = scalar_lea.vmem %s236_s16, 32 }
  0x96   : > { %p1106_p0 = scmp.ne.s32.totalorder %s236_s16, %s1105_s11  ;;  %p1113_p2 = scmp.lt.s32.totalorder %s236_s16, %s236_s16 }
  0x97   : > { %p1114_p6 = scmp.lt.s32.totalorder %s1112_s23, %s1105_s11 }
  0x98   : > { %p1108_p1 = pnand %p1106_p0, %p1700_p13 }
  0x99   : > { %p1115_p10 = por %p1114_p6, %p1113_p2 }
  0x9a   : > { %p1109_p9 = pneg %p1108_p1 }
  0x9c   : > { %p1116_p7 = pnand %p1115_p10, %p1109_p9 }
  0x9e   : > { %1119 = shalt.err (!%p1116_p7)
}
  0x9f   : > { %890 = dma.hbm_to_vmem [thread:$0]  (!%p1701_p12), %s1656_s4, 16, %s236_s16, [#allocation10]  }
  0xa0   : > { %s1120_s24 = scalar_lea.hbm %s1387_s27, 256  ;;  %p1702_p4 = scmp.ne.s32.totalorder %s1689_s17, 0 }
  0xa1   : > { %p1121_p13 = scmp.ne.s32.totalorder %s1387_s27, %s1120_s24  ;;  %s1125_s2 = scalar_lea.hbm %s1657_s5, 768 }
  0xa2   : > { %p1126_p7 = scmp.lt.u32.totalorder %s1387_s27, %s1657_s5  ;;  %p1127_p8 = scmp.lt.u32.totalorder %s1125_s2, %s1120_s24 }
  0xa3   : > { %p1123_p5 = pnand %p1121_p13, %p1702_p4  ;;  %p1129_p0 = scmp.lt.u32.totalorder %s1120_s24, %s1387_s27 }
  0xa4   : > { %p1128_p11 = por %p1127_p8, %p1126_p7 }
  0xa5   : > { %p1124_p3 = pneg %p1123_p5 }
  0xa6   : > { %p1130_p1 = por %p1129_p0, %p1128_p11 }
  0xa8   : > { %p1131_p9 = pnand %p1130_p1, %p1124_p3 }
  0xaa   : > { %1134 = shalt.err (!%p1131_p9)
}
  0xab   : > { %s1135_s16 = scalar_lea.vmem %s1390_s9, 256  ;;  %s1247_s26 = smov [#allocation11]  }
  0xac   : > { %p1136_p12 = scmp.ne.s32.totalorder %s1390_s9, %s1135_s16  ;;  %s1140_s0 = sshll.u32 %s1247_s26, 4  ;;  %s1141_s0 = int_to_ptr.vmem [resolvable:$false] %s1140_s0 }
  0xad   : > { %s1142_s21 = scalar_lea.vmem %s1141_s0, 512  ;;  %p1143_p10 = scmp.lt.s32.totalorder %s1390_s9, %s1141_s0 }
  0xae   : > { %p1138_p2 = pnand %p1136_p12, %p1702_p4  ;;  %p1144_p13 = scmp.lt.s32.totalorder %s1142_s21, %s1135_s16 }
  0xb0   : > { %p1139_p6 = pneg %p1138_p2  ;;  %p1145_p5 = por %p1144_p13, %p1143_p10 }
  0xb2   : > { %p1146_p7 = pnand %p1145_p5, %p1139_p6 }
  0xb4   : > { %1149 = shalt.err (!%p1146_p7)
}
  0xb5   : > { %p1703_p3 = scmp.ne.s32.totalorder %s1688_s14, 0  ;;  %s1704_s20 = smov 8  }
  0xb6   : > { %s1705_s19 = smov 128   ;;  %p1706_p4 = scmp.ne.s32.totalorder %s1695_s13, 0 }
  0xb7   : > { %900 = dma.hbm_to_vmem [thread:$0]  (!%p1703_p3), %s1387_s27, 256, %s1390_s9, %s1347_s15, %s1705_s19, %s1705_s19, %s1704_s20  }
  0xb8   : > { %312 = sbr.rel (%p1706_p4) target bundleno = 693 (0x2b5), region = 44  ;;  %s314_s17 = sand.u32 (!%p1706_p4), 1, %s1393_s10  }
  0xb9   : > { %s1566_s8 = sand.u32 (!%p1706_p4), 1, %s1228_s22   ;;  %s315_s14 = scalar_lea.sflag (!%p1706_p4), [#allocation3], %s314_s17 }
  0xba   : > { %s1569_s11 = sshll.u32 (!%p1706_p4), %s1566_s8, 4  ;;  %p1707_p8 = scmp.ne.s32.totalorder (!%p1706_p4), %s1690_s30, 0 }
  0xbb   : > { %s318_s23 = scalar_lea.vmem (!%p1706_p4), [#allocation2], %s1569_s11 }
  0xbf   : > { %1195 = dma.done.wait (%p1707_p8), %s315_s14, 256  }
  0xc0   : > { %1197 = vsyncadd (%p1707_p8), %s315_s14, 4294967040  ;;  %p1708_p11 = scmp.eq.s32.totalorder %s1393_s10, 0 }
  0xc2   : > { %1199 = dma.done.wait (%p1708_p11), [#allocation6], 1152   ;;  %p1709_p0 = pmov %p1708_p11 }
  0xc3   : > { %s810_s15 = sshll.u32 %s1566_s8, 3 }
  0xc4   : > { %1201 = vsyncadd (%p1709_p0), [#allocation6], 4294966144  ;;  %s331_s27 = scalar_lea.vmem [#allocation7], %s810_s15 }
  0xc5   : > { %1203 = dma.done.wait (%p1707_p8), %s315_s14, 128  }
  0xc6   : > { %1205 = vsyncadd (%p1707_p8), %s315_s14, 4294967168  ;;  %p1710_p1 = pmov %p1709_p0 }
  0xc7   : > { %p1711_p9 = pmov %p1709_p0 }
  0xc8   : > { %1207 = dma.done.wait (%p1710_p1), [#allocation6], 512  }
  0xc9   : > { %1209 = vsyncadd (%p1711_p9), [#allocation6], 4294966784  ;;  %p1712_p12 = pmov %p1709_p0 }
  0xca   : > { %p1713_p2 = pmov %p1709_p0 }
  0xcb   : > { %1211 = dma.done.wait (%p1712_p12), [#allocation10], 16  }
  0xcc   : > { %1213 = vsyncadd (%p1713_p2), [#allocation10], 4294967280  ;;  %s348_s9 = scalar_lea.vmem [#allocation11], %s1569_s11 }
  0xcd   : > { %1215 = dma.done.wait (%p1707_p8), %s315_s14, 256  }
  0xce   : > { %1217 = vsyncadd (%p1707_p8), %s315_s14, 4294967040  ;;  %v1248_v0 = vmov 0   ;;  %v1249_v1 = vmov 0.0   ;;  %v959_v2 = vld [vmem:[#allocation5] sm:$0xff]   ;;  %v960_v3 = vld [vmem:[#allocation5 + $0x8] sm:$0xff]   ;;  %vm475_vm0 = vcmask 130048  }
  0xcf   : > { %479 = vmatprep.subr.bf16.mxu0 %v1248_v0  ;;  %958 = vset.pattern.permute.xlu0 %v1248_v0  ;;  %v961_v4 = vld [vmem:[#allocation5 + $0x10] sm:$0xff]   ;;  %v962_v5 = vld [vmem:[#allocation5 + $0x18] sm:$0xff]   ;;  %v963_v11 = vld [vmem:[#allocation5 + $0x20] sm:$0xff]   ;;  %s1250_s30 = smov 32   ;;  %vm1251_vm1 = vmmov 0   ;;  %vm544_vm2 = vcmask 261120  }
  0xd0   : > { %849 = vmatprep.subr.bf16.mxu1 %v1249_v1  ;;  %480 = vmatpush1.bf16.msra.mxu0 %v959_v2  ;;  %v970_v6 = vld [vmem:[%s318_s23 + $0x4] ss:$8 sps:$4 sm:$0xff]   ;;  %v520_v7 = vld [vmem:[%s348_s9] sm:$0xff]  ;;  %vm589_vm3 = vcmask 523264   ;;  %v828_v31 = vld [vmem:[#allocation9] ss:$0 sm:$0xff] }
  0xd1   : > { %481 = vmatprep.subr.bf16.mxu0 %v1248_v0  ;;  %v521_v8 = vld [vmem:[%s348_s9 + $0x8] sm:$0xff]  ;;  %524 = vperm.xlu0 %958, %v520_v7   ;;  %s386_s13 = scalar_lea.vmem [#allocation12], %s1569_s11  ;;  %s843_s12 = sshll.u32 %s1393_s10, 8 }
  0xd2   : > { %v971_v9 = vld [vmem:[%s331_s27] sm:$0xff]   ;;  %826 = vmatprep.mubr.msk.bf16.mxu0 %vm475_vm0, %v970_v6  ;;  %v972_v10 = vld [vmem:[#allocation8] sm:$0xff]   ;;  %v973_v12 = vld [vmem:[#allocation8 + $0x8] sm:$0xff]   ;;  %857 = vmatprep.mubr.msk.bf16.mxu1 %vm1251_vm1, %v1249_v1  ;;  %s649_s25 = sshll.u32 %s386_s13, 4  ;;  %s1609_s1 = scalar_lea.hbm %s1658_s6, %s843_s12  ;;  %s1604_s25 = int_to_ptr.vmem [resolvable:$true] %s649_s25 }
  0xd3   : > { %542 = vrot.lane.b32.xlu1 %v971_v9, %s1250_s30  ;;  %850 = vmatpush3.bf16.msra.mxu1 %v972_v10  ;;  %v964_v13 = vld [vmem:[#allocation5 + $0x28] sm:$0xff]   ;;  %v965_v14 = vld [vmem:[#allocation5 + $0x30] sm:$0xff]   ;;  %v966_v15 = vld [vmem:[#allocation5 + $0x38] sm:$0xff]   ;;  %s636_s10 = scalar_lea.sflag [#allocation4], %s1566_s8  ;;  %s1150_s2 = scalar_lea.vmem %s1604_s25, 256 }
  0xd4   : > { %482 = vmatpush1.bf16.msra.mxu0 %v960_v3  ;;  %851 = vmatprep.subr.bf16.mxu1 %v1249_v1  ;;  %v967_v16 = vld [vmem:[#allocation5 + $0x40] sm:$0xff]   ;;  %v974_v18 = vld [vmem:[#allocation8 + $0x10] sm:$0xff]   ;;  %v975_v19 = vld [vmem:[#allocation8 + $0x18] sm:$0xff]   ;;  %p1151_p6 = scmp.ne.s32.totalorder %s1604_s25, %s1150_s2  ;;  %p1714_p10 = scmp.ne.s32.totalorder %s1692_s7, 0 }
  0xd5   : > { %483 = vmatprep.subr.bf16.mxu0 %v1248_v0  ;;  %529 = vperm.xlu0 %958, %v521_v8   ;;  %v968_v17 = vld [vmem:[%s318_s23] ss:$8 sps:$4 sm:$0xff]   ;;  %s1252_s18 = smov [#allocation12]  }
  0xd6   : > { %p1152_p13 = pnand %p1151_p6, %p1714_p10  ;;  %s1154_s29 = sshll.u32 %s1252_s18, 4  ;;  %s1155_s29 = int_to_ptr.vmem [resolvable:$false] %s1154_s29 }
  0xd7   : > { %852 = vmatpush3.bf16.msra.mxu1 %v973_v12  ;;  %s1156_s16 = scalar_lea.vmem %s1155_s29, 512  ;;  %p1157_p7 = scmp.lt.s32.totalorder %s1604_s25, %s1155_s29 }
  0xd8   : > { %484 = vmatpush1.bf16.msra.mxu0 %v961_v4  ;;  %853 = vmatprep.subr.bf16.mxu1 %v1249_v1  ;;  %p1153_p5 = pneg %p1152_p13  ;;  %p1158_p3 = scmp.lt.s32.totalorder %s1156_s16, %s1150_s2 }
  0xd9   : > { %485 = vmatprep.subr.bf16.mxu0 %v1248_v0 }
  0xda   : > { %p1159_p4 = por %p1158_p3, %p1157_p7 }
  0xdb   : > { %854 = vmatpush3.bf16.msra.mxu1 %v974_v18 }
  0xdc   : > { %486 = vmatpush1.bf16.msra.mxu0 %v962_v5  ;;  %855 = vmatprep.subr.bf16.mxu1 %v1249_v1  ;;  %p1160_p8 = pnand %p1159_p4, %p1153_p5 }
  0xdd   : > { %487 = vmatprep.subr.bf16.mxu0 %v1248_v0 }
  0xdf   : > { %856 = vmatpush3.bf16.msra.mxu1 %v975_v19 }
  0xe0   : > { %488 = vmatpush1.bf16.msra.mxu0 %v963_v11 }
  0xe1   : > { %489 = vmatprep.subr.bf16.mxu0 %v1248_v0 }
  0xe4   : > { %490 = vmatpush1.bf16.msra.mxu0 %v964_v13 }
  0xe5   : > { %491 = vmatprep.subr.bf16.mxu0 %v1248_v0 }
  0xe8   : > { %492 = vmatpush1.bf16.msra.mxu0 %v965_v14 }
  0xe9   : > { %493 = vmatprep.subr.bf16.mxu0 %v1248_v0 }
  0xec   : > { %494 = vmatpush1.bf16.msra.mxu0 %v966_v15 }
  0xed   : > { %495 = vmatprep.subr.bf16.mxu0 %v1248_v0 }
  0xf0   : > { %496 = vmatpush1.bf16.msra.mxu0 %v967_v16 }
  0xf3   : > { %512 = vmatmul.mubr.bf16.vlgmr.msra.gmra.mrb[0].mxu0 %v968_v17 }
 0x145   : > { %v543_v28 = vpop.permute.xlu1 %542 }
 0x150   : > { %v525_v20 = vpop.permute.xlu0 %524 }
 0x151   : > { %v563_v32 = vmul.f32 %v828_v31, %v525_v20 }
 0x154   : > { %v530_v23 = vpop.permute.xlu0 %529 }
 0x155   : > { %v564_v34 = vmul.f32 %v828_v31, %v530_v23 }
 0x1c6   : > { %v513_v21 = vpop.f32.mrb[0].mxu0 }
 0x1c7   : > { %v515_v22 = vpop.f32.mrb[1].mxu0  ;;  %v532_v25 = vmul.f32 %v525_v20, %v513_v21 }
 0x1c8   : > { %v516_v24 = vpop.f32.mrb[2].mxu0 }
 0x1c9   : > { %v533_v26 = vmul.f32 %v530_v23, %v516_v24  ;;  %v518_v27 = vpop.f32.mrb[3].mxu0 }
 0x1cb   : > { %v534_v29 = vpack.c.bf16 %v533_v26, %v532_v25 }
 0x1cd   : > { %v547_v30 = vsel %vm544_vm2, %v534_v29, %v543_v28 }
 0x1ce   : > { %858 = vmatmul.mubr.msk.bf16.vlgmr.msra.gmra.mrb[0].mxu1 %vm589_vm3, %v547_v30 }
 0x2a1   : > { %v626_v33 = vpop.f32.mrb[0].mxu1 }
 0x2a2   : > { %v627_v35 = vadd.f32 %v626_v33, %v563_v32  ;;  %v859_v36 = vpop.f32.mrb[1].mxu1 }
 0x2a3   : > { %v629_v37 = vpop.f32.mrb[2].mxu1 }
 0x2a4   : > { %633 = vst [vmem:[%s386_s13] sm:$0xff] %v627_v35  ;;  %v630_v38 = vadd.f32 %v629_v37, %v564_v34  ;;  %v860_v39 = vpop.f32.mrb[3].mxu1 }
 0x2a6   : > { %634 = vst [vmem:[%s386_s13 + $0x8] sm:$0xff] %v630_v38 }
 0x2a7   : > { %1163 = shalt.err (!%p1160_p8)
}
 0x2a8   : > { %s1164_s26 = scalar_lea.hbm %s1609_s1, 256  ;;  %s1168_s20 = scalar_lea.hbm %s1658_s6, 768 }
 0x2a9   : > { %p1165_p11 = scmp.ne.s32.totalorder %s1609_s1, %s1164_s26  ;;  %p1169_p9 = scmp.lt.u32.totalorder %s1609_s1, %s1658_s6 }
 0x2aa   : > { %p1170_p12 = scmp.lt.u32.totalorder %s1168_s20, %s1164_s26  ;;  %p1172_p6 = scmp.lt.u32.totalorder %s1164_s26, %s1609_s1 }
 0x2ab   : > { %p1166_p0 = pnand %p1165_p11, %p1714_p10 }
 0x2ac   : > { %p1171_p2 = por %p1170_p12, %p1169_p9 }
 0x2ad   : > { %p1167_p1 = pneg %p1166_p0 }
 0x2ae   : > { %p1173_p13 = por %p1172_p6, %p1171_p2 }
 0x2b0   : > { %p1174_p5 = pnand %p1173_p13, %p1167_p1 }
 0x2b2   : > { %1177 = shalt.err (!%p1174_p5)
}
 0x2b3   : > { %s1253_s11 = smov 128   ;;  %s1254_s14 = smov 8  }
 0x2b4   : > { %879 = dma.vmem_to_hbm [thread:$0]  (%p1714_p10), %s1604_s25, 256, %s1609_s1, %s636_s10, %s1253_s11, %s1253_s11, %s1254_s14  }
 0x2b5 PF: > { %s1715_s23 = sld [smem:[#allocation22_spill]]  ;;  %s1716_s15 = sld [smem:[#allocation20_spill]] }
 0x2b6   : > { %s1717_s27 = sld [smem:[#allocation25_spill]] }
 0x2bb   : > { %p912_p7 = scmp.ge.s32.totalorder %s1715_s23, 2  ;;  %s664_s9 = sand.u32 1, %s1716_s15  }
 0x2bc   : > { %p1718_p3 = scmp.ne.s32.totalorder %s1717_s27, 0  ;;  %s665_s30 = scalar_lea.sflag [#allocation4], %s664_s9 }
 0x2be   : > { %p902_p4 = pnand %p912_p7, %p1718_p3 }
 0x2c0   : > { %1219 = dma.done.wait (!%p902_p4), %s665_s30, 256  }
 0x2c1   : > { %1221 = vsyncadd (!%p902_p4), %s665_s30, 4294967040  ;;  %s1719_s24 = sld [smem:[#allocation23_spill]]  ;;  %s1720_s13 = sld [smem:[#allocation21_spill]] }
 0x2c2   : > { %s1721_s23 = sld [smem:[#allocation24_spill]]  ;;  %s1722_s21 = smov %s1228_s22 }
 0x2c7   : > { %p21_p8 = scmp.ge.s32.totalorder %s1719_s24, 5   ;;  %s1723_s22 = smov %s1720_s13 }
 0x2c9   :  { %23 = sbr.rel (!%p21_p8) target bundleno = 11 (0xb), region = 123 }
 0x2d0   :  { %670 = vsyncpa [#allocation3], 1 }
 0x2d1   :  { %672 = vsyncpa [#allocation3 + $0x1], 1 }
 0x2d2   :  { %673 = vsyncpa [#allocation6], 1 }
 0x2d3   :  { %674 = vsyncpa [#allocation10], 1 }
 0x2d4   :  { %675 = vsyncpa [#allocation4], 1 }
 0x2d5   :  { %677 = vsyncpa [#allocation4 + $0x1], 1 }

</bundles_post_ra>
